<compile_context>
chip_gen: v7x
topology: tpu7x:2x2x1
jax: 0.10.0
libtpu: 0.0.40
codegen_flags: <defaults>
</compile_context>

<pallas_src>
import functools
import math

import jax
import jax.numpy as jnp
from jax import lax
from jax.experimental import pallas as pl
from jax.experimental.pallas import tpu as pltpu


def _round_up(x, m):
    return (x + m - 1) // m * m


# ---------------------------------------------------------------------------
# Kernel
# ---------------------------------------------------------------------------
def _nce_kernel(s_ref, tpos_ref, tneg_ref, o_ref, m_ref, l_ref, pos_ref, *,
                inv_temp, n_valid, tile_cols, last_col_is_ragged, mm_dtype):
    k = pl.program_id(1)

    @pl.when(k == 0)
    def _init():
        # pos_n = <s_n, t_n> / T, computed on the VPU in f32 directly from the
        # (never-downcast) inputs -- no diagonal extraction, no cast pair.
        s32 = s_ref[...].astype(jnp.float32)
        t32 = tpos_ref[...].astype(jnp.float32)
        pos_ref[...] = jnp.sum(s32 * t32, axis=1, keepdims=True) * inv_temp
        m_ref[...] = jnp.full(m_ref.shape, -jnp.inf, jnp.float32)
        l_ref[...] = jnp.zeros(l_ref.shape, jnp.float32)

    # sim[n, j] = <s_n, t_j>. Contraction over the last dim of BOTH operands,
    # so the RHS tile is consumed transposed by the MXU (no .T / XLU copy).
    s = s_ref[...]
    t = tneg_ref[...]
    if mm_dtype is not None and s.dtype != mm_dtype:
        s = s.astype(mm_dtype)
        t = t.astype(mm_dtype)
    sim = lax.dot_general(s, t, dimension_numbers=(((1,), (1,)), ((), ())),
                          preferred_element_type=jnp.float32)
    # Temperature applied once to the (tr, tc) f32 tile: cheaper than rescaling
    # the (tr, C) LHS on every column step and avoids bf16 re-quantization.
    sim = sim * inv_temp

    def _online_update(sim_tile):
        m_prev = m_ref[...]
        m_new = jnp.maximum(m_prev, jnp.max(sim_tile, axis=1, keepdims=True))
        l_ref[...] = (l_ref[...] * jnp.exp(m_prev - m_new)
                      + jnp.sum(jnp.exp(sim_tile - m_new), axis=1, keepdims=True))
        m_ref[...] = m_new

    if last_col_is_ragged:
        last_k = pl.num_programs(1) - 1

        @pl.when(k != last_k)
        def _update_full():
            _online_update(sim)

        @pl.when(k == last_k)
        def _update_ragged():
            # Only the final column tile contains padded columns; the
            # iota/compare/select runs on this single grid step only.
            col = k * tile_cols + lax.broadcasted_iota(jnp.int32, sim.shape, 1)
            _online_update(jnp.where(col < n_valid, sim, -jnp.inf))
    else:
        _online_update(sim)

    @pl.when(k == pl.num_programs(1) - 1)
    def _finalize():
        # loss_n = logsumexp_j(sim[n, j]) - pos_n
        o_ref[...] = m_ref[...] + jnp.log(l_ref[...]) - pos_ref[...]


# ---------------------------------------------------------------------------
# VMEM budget + tiling heuristics
# ---------------------------------------------------------------------------
def _vmem_budget():
    """Generation-aware scoped-VMEM limit and in-kernel working-set budget."""
    phys = 64 * 1024 * 1024          # conservative fallback (v7x per-TC VMEM)
    try:
        info = pltpu.get_tpu_info()
        phys = int(getattr(info, "vmem_capacity_bytes", phys)) or phys
    except Exception:
        pass
    # Raise the scoped limit above the 16/32 MiB defaults but keep headroom
    # for compiler-internal scratch: ~96 MiB on 128-MiB parts (v5e/v6e),
    # ~48 MiB on v7x's 64 MiB per-TensorCore VMEM.
    limit = (phys * 3) // 4
    budget = max(limit - (8 << 20), limit // 2)
    return limit, budget


def _vmem_bytes(tr, tc, c, itemsize, neg_bufs):
    feats = itemsize * c * (2 * tr            # feat_s row tile (double-buffered)
                            + 2 * tr          # feat_t "pos" row tile
                            + neg_bufs * tc)  # streamed feat_t column tile
    sim = 4 * tr * tc * 3                     # f32 sim + exp/select temporaries
    small = 4 * tr * 16                       # out block + m/l/pos scratch
    return feats + sim + small


def _choose_tiles(n, c, itemsize, budget, neg_bufs):
    """Pick (row_tile, col_tile).

    * MXU-aligned tiles (multiples of 128, preferring 512/256) once the batch
      is large enough; 8/16-row granularity (bf16 sublane packing) otherwise.
    * Row tile preferred large (raises reuse / arithmetic intensity of the
      streamed feat_t tile); column tile sized to VMEM / f32-sim pressure.
    * Keep >= 2 row tiles for large batches so the "parallel" grid axis can be
      sharded across both TensorCores on v7x (harmless on 1-TC chips).
    """
    gran = 16 if itemsize <= 2 else 8
    n_aligned = _round_up(n, gran)

    if n_aligned <= 256:
        t = n_aligned
        while t > gran and _vmem_bytes(t, t, c, itemsize, neg_bufs) > budget:
            t = _round_up(t // 2, gran)
        return t, t

    cap = _round_up(n_aligned, 128)
    row_cap = min(cap, max(128, (cap // 2) // 128 * 128))
    for tr in (512, 256, 128):
        if tr > row_cap:
            continue
        for tc in (512, 256, 128):
            if tc > cap:
                continue
            if _vmem_bytes(tr, tc, c, itemsize, neg_bufs) <= budget:
                return tr, tc
    # C would need to be enormous to get here; fall back and let the compiler
    # manage (or spill) rather than fail tile selection.
    return 128, 128


# ---------------------------------------------------------------------------
# Wrapper
# ---------------------------------------------------------------------------
def nce_loss(feat_s, feat_t, temperature, *, row_tile=None, col_tile=None,
             matmul_dtype=None, neg_buffers=None):
    """Pallas TPU implementation of NCELoss.forward(feat_s, feat_t).

    matmul_dtype: optional dtype (e.g. jnp.bfloat16) for the MXU operands of
      the similarity matmul; accumulation stays f32. Inputs that are already
      <= 16-bit take the fast MXU path with no cast. None keeps the input
      dtype (bit-faithful to the f32 PyTorch reference).
    neg_buffers: optional pipeline depth for the streamed feat_t tile
      (e.g. 3 on v5e if its DMA shows up exposed in traces).
    """
    n, c = feat_s.shape
    assert feat_t.shape == (n, c)
    itemsize = jnp.dtype(feat_s.dtype).itemsize

    vmem_limit, budget = _vmem_budget()
    nbuf = 2 if neg_buffers is None else int(neg_buffers)
    gran = 16 if itemsize <= 2 else 8

    if row_tile is None or col_tile is None:
        tr, tc = _choose_tiles(n, c, itemsize, budget, nbuf)
    if row_tile is not None:
        tr = _round_up(max(int(row_tile), gran), gran)
    if col_tile is not None:
        tc = _round_up(max(int(col_tile), gran), gran)

    n_rows = _round_up(n, tr)                 # padded rows of feat_s / losses
    n_cols = _round_up(n, tc)                 # columns covered by the neg grid
    n_t = _round_up(n, math.lcm(tr, tc))      # feat_t padded so both views tile it

    if n_rows != n:
        feat_s = jnp.pad(feat_s, ((0, n_rows - n), (0, 0)))
    if n_t != n:
        feat_t = jnp.pad(feat_t, ((0, n_t - n), (0, 0)))

    grid = (n_rows // tr, n_cols // tc)

    mm_dtype = None
    if matmul_dtype is not None and jnp.dtype(matmul_dtype) != feat_s.dtype:
        mm_dtype = jnp.dtype(matmul_dtype)

    kernel = functools.partial(
        _nce_kernel,
        inv_temp=1.0 / float(temperature),
        n_valid=n,
        tile_cols=tc,
        last_col_is_ragged=(n % tc != 0),
        mm_dtype=mm_dtype,
    )

    neg_spec_kwargs = {}
    if neg_buffers is not None and int(neg_buffers) != 2:
        neg_spec_kwargs["pipeline_mode"] = pl.Buffered(int(neg_buffers))

    losses = pl.pallas_call(
        kernel,
        out_shape=jax.ShapeDtypeStruct((n_rows, 1), jnp.float32),
        grid_spec=pltpu.PrefetchScalarGridSpec(
            num_scalar_prefetch=0,
            grid=grid,
            in_specs=[
                pl.BlockSpec((tr, c), lambda i, k: (i, 0)),   # feat_s row tile
                pl.BlockSpec((tr, c), lambda i, k: (i, 0)),   # feat_t row tile (pos)
                pl.BlockSpec((tc, c), lambda i, k: (k, 0),    # feat_t col tile (neg)
                             **neg_spec_kwargs),
            ],
            out_specs=pl.BlockSpec((tr, 1), lambda i, k: (i, 0)),
            scratch_shapes=[
                pltpu.VMEM((tr, 1), jnp.float32),   # running max m
                pltpu.VMEM((tr, 1), jnp.float32),   # running sum-exp l
                pltpu.VMEM((tr, 1), jnp.float32),   # positive logits
            ],
        ),
        compiler_params=pltpu.CompilerParams(
            dimension_semantics=("parallel", "arbitrary"),
            vmem_limit_bytes=int(vmem_limit),
        ),
    )(feat_s, feat_t, feat_t)

    # F.cross_entropy default reduction: mean over the TRUE batch rows only.
    return jnp.mean(losses[:n, 0])


# ---------------------------------------------------------------------------
# Pure-JAX reference (mirrors the PyTorch module exactly)
# ---------------------------------------------------------------------------
def _nce_loss_ref(feat_s, feat_t, temperature):
    feat_s = feat_s.astype(jnp.float32)
    feat_t = feat_t.astype(jnp.float32)
    n = feat_s.shape[0]
    l_pos = jnp.einsum("nc,nc->n", feat_s, feat_t)[:, None]
    l_neg = jnp.einsum("nc,kc->nk", feat_s, feat_t)
    l_neg = jnp.where(jnp.eye(n, dtype=bool), -jnp.inf, l_neg)
    logits = jnp.concatenate([l_pos, l_neg], axis=1) / temperature
    lse = jax.scipy.special.logsumexp(logits, axis=1)
    return jnp.mean(lse - logits[:, 0])


if __name__ == "__main__":
    # NCELoss(temperature, num_negative_samples_config): only temperature used.
    temperature = 0.07
    hidden = 32

    # 1) Small single-tile path (batch=8, f32).
    ks, kt = jax.random.split(jax.random.PRNGKey(0))
    fs = jax.random.normal(ks, (8, hidden), dtype=jnp.float32)
    ft = jax.random.normal(kt, (8, hidden), dtype=jnp.float32)
    loss = jax.block_until_ready(nce_loss(fs, ft, temperature))
    ref = jax.block_until_ready(_nce_loss_ref(fs, ft, temperature))
    assert jnp.isfinite(loss), "loss is not finite"
    assert jnp.allclose(loss, ref, rtol=1e-5, atol=1e-4), (loss, ref)

    # 2) Multi-tile online-logsumexp path with ragged padding and decoupled
    #    row/column tiles (batch=20, 8-row x 16-col tiles -> 3x2 grid).
    ks2, kt2 = jax.random.split(jax.random.PRNGKey(1))
    fs2 = jax.random.normal(ks2, (20, hidden), dtype=jnp.float32)
    ft2 = jax.random.normal(kt2, (20, hidden), dtype=jnp.float32)
    loss2 = jax.block_until_ready(
        nce_loss(fs2, ft2, temperature, row_tile=8, col_tile=16))
    ref2 = jax.block_until_ready(_nce_loss_ref(fs2, ft2, temperature))
    assert jnp.isfinite(loss2), "tiled loss is not finite"
    assert jnp.allclose(loss2, ref2, rtol=1e-5, atol=1e-4), (loss2, ref2)

    # 3) bf16 inputs exercise the fast bf16 MXU path (f32 accumulation).
    ks3, kt3 = jax.random.split(jax.random.PRNGKey(2))
    fs3 = jax.random.normal(ks3, (16, hidden), dtype=jnp.float32).astype(jnp.bfloat16)
    ft3 = jax.random.normal(kt3, (16, hidden), dtype=jnp.float32).astype(jnp.bfloat16)
    loss3 = jax.block_until_ready(nce_loss(fs3, ft3, temperature))
    ref3 = jax.block_until_ready(_nce_loss_ref(fs3, ft3, temperature))
    assert jnp.isfinite(loss3), "bf16 loss is not finite"
    assert jnp.allclose(loss3, ref3, rtol=5e-3, atol=5e-2), (loss3, ref3)

    print("KERNEL_OK")
</pallas_src>

<mosaic_0001>
module attributes {stable_mosaic.version = 11 : i64} {
  func.func @_nce_kernel(%arg0: i32, %arg1: i32, %arg2: memref<8x32xf32, #tpu.memory_space<vmem>>, %arg3: memref<8x32xf32, #tpu.memory_space<vmem>>, %arg4: memref<8x32xf32, #tpu.memory_space<vmem>>, %arg5: memref<8x1xf32, #tpu.memory_space<vmem>>, %arg6: memref<8x1xf32, #tpu.memory_space<vmem>>, %arg7: memref<8x1xf32, #tpu.memory_space<vmem>>, %arg8: memref<8x1xf32, #tpu.memory_space<vmem>>) attributes {dimension_semantics = [#tpu.dimension_semantics<parallel>, #tpu.dimension_semantics<arbitrary>], iteration_bounds = array<i64: 1, 1>, scalar_prefetch = 0 : i64, scratch_operands = 3 : i64, tpu.core_type = #tpu.core_type<tc>, window_params = [{transform_indices = @transform_0, window_bounds = array<i64: 8, 32>}, {transform_indices = @transform_1, window_bounds = array<i64: 8, 32>}, {transform_indices = @transform_2, window_bounds = array<i64: 8, 32>}, {transform_indices = @transform_3, window_bounds = array<i64: 8, 1>}]} {
    %c0_i32 = arith.constant 0 : i32
    %0 = arith.cmpi eq, %arg1, %c0_i32 : i32
    %1 = arith.extui %0 : i1 to i32
    %c0_i32_0 = arith.constant 0 : i32
    %2 = arith.cmpi ne, %1, %c0_i32_0 : i32
    scf.if %2 {
      %c0_17 = arith.constant 0 : index
      %c0_18 = arith.constant 0 : index
      %27 = vector.load %arg2[%c0_17, %c0_18] : memref<8x32xf32, #tpu.memory_space<vmem>>, vector<8x32xf32>
      %c0_19 = arith.constant 0 : index
      %c0_20 = arith.constant 0 : index
      %28 = vector.load %arg3[%c0_19, %c0_20] : memref<8x32xf32, #tpu.memory_space<vmem>>, vector<8x32xf32>
      %29 = arith.mulf %27, %28 : vector<8x32xf32>
      %cst_21 = arith.constant dense<0.000000e+00> : vector<8xf32>
      %30 = vector.multi_reduction <add>, %29, %cst_21 [1] : vector<8x32xf32> to vector<8xf32>
      %31 = vector.shape_cast %30 : vector<8xf32> to vector<8x1xf32>
      %cst_22 = arith.constant 14.2857141 : f32
      %32 = vector.broadcast %cst_22 : f32 to vector<8x1xf32>
      %33 = arith.mulf %31, %32 : vector<8x1xf32>
      %c0_23 = arith.constant 0 : index
      %c0_24 = arith.constant 0 : index
      %34 = vector.load %arg8[%c0_23, %c0_24] : memref<8x1xf32, #tpu.memory_space<vmem>>, vector<8x1xf32>
      tpu.vector_store %arg8[%c0_23, %c0_24], %33 {strides = array<i32>} : memref<8x1xf32, #tpu.memory_space<vmem>>, vector<8x1xf32>,
      %cst_25 = arith.constant 0xFF800000 : f32
      %35 = vector.broadcast %cst_25 : f32 to vector<8x1xf32>
      %c0_26 = arith.constant 0 : index
      %c0_27 = arith.constant 0 : index
      %36 = vector.load %arg6[%c0_26, %c0_27] : memref<8x1xf32, #tpu.memory_space<vmem>>, vector<8x1xf32>
      tpu.vector_store %arg6[%c0_26, %c0_27], %35 {strides = array<i32>} : memref<8x1xf32, #tpu.memory_space<vmem>>, vector<8x1xf32>,
      %cst_28 = arith.constant 0.000000e+00 : f32
      %37 = vector.broadcast %cst_28 : f32 to vector<8x1xf32>
      %c0_29 = arith.constant 0 : index
      %c0_30 = arith.constant 0 : index
      %38 = vector.load %arg7[%c0_29, %c0_30] : memref<8x1xf32, #tpu.memory_space<vmem>>, vector<8x1xf32>
      tpu.vector_store %arg7[%c0_29, %c0_30], %37 {strides = array<i32>} : memref<8x1xf32, #tpu.memory_space<vmem>>, vector<8x1xf32>,
    } else {
    }
    %c0 = arith.constant 0 : index
    %c0_1 = arith.constant 0 : index
    %3 = vector.load %arg2[%c0, %c0_1] : memref<8x32xf32, #tpu.memory_space<vmem>>, vector<8x32xf32>
    %c0_2 = arith.constant 0 : index
    %c0_3 = arith.constant 0 : index
    %4 = vector.load %arg4[%c0_2, %c0_3] : memref<8x32xf32, #tpu.memory_space<vmem>>, vector<8x32xf32>
    %cst = arith.constant dense<0.000000e+00> : vector<8x8xf32>
    %5 = tpu.matmul %3, %4, %cst {dimension_numbers = #tpu.dot_dimension_numbers<[1], [1], [0], [0], [0, 0, 1, 0], [], []>} : vector<8x32xf32>, vector<8x32xf32>, vector<8x8xf32> -> vector<8x8xf32>
    %cst_4 = arith.constant 14.2857141 : f32
    %6 = vector.broadcast %cst_4 : f32 to vector<8x8xf32>
    %7 = arith.mulf %5, %6 : vector<8x8xf32>
    %c0_5 = arith.constant 0 : index
    %c0_6 = arith.constant 0 : index
    %8 = vector.load %arg6[%c0_5, %c0_6] : memref<8x1xf32, #tpu.memory_space<vmem>>, vector<8x1xf32>
    %cst_7 = arith.constant dense<0xFF800000> : vector<8xf32>
    %9 = vector.multi_reduction <maximumf>, %7, %cst_7 [1] : vector<8x8xf32> to vector<8xf32>
    %10 = vector.shape_cast %9 : vector<8xf32> to vector<8x1xf32>
    %11 = arith.maximumf %8, %10 : vector<8x1xf32>
    %c0_8 = arith.constant 0 : index
    %c0_9 = arith.constant 0 : index
    %12 = vector.load %arg7[%c0_8, %c0_9] : memref<8x1xf32, #tpu.memory_space<vmem>>, vector<8x1xf32>
    %13 = arith.subf %8, %11 : vector<8x1xf32>
    %14 = math.exp %13 : vector<8x1xf32>
    %15 = arith.mulf %12, %14 : vector<8x1xf32>
    %16 = vector.broadcast %11 : vector<8x1xf32> to vector<8x8xf32>
    %17 = arith.subf %7, %16 : vector<8x8xf32>
    %18 = math.exp %17 : vector<8x8xf32>
    %cst_10 = arith.constant dense<0.000000e+00> : vector<8xf32>
    %19 = vector.multi_reduction <add>, %18, %cst_10 [1] : vector<8x8xf32> to vector<8xf32>
    %20 = vector.shape_cast %19 : vector<8xf32> to vector<8x1xf32>
    %21 = arith.addf %15, %20 : vector<8x1xf32>
    %c0_11 = arith.constant 0 : index
    %c0_12 = arith.constant 0 : index
    %22 = vector.load %arg7[%c0_11, %c0_12] : memref<8x1xf32, #tpu.memory_space<vmem>>, vector<8x1xf32>
    tpu.vector_store %arg7[%c0_11, %c0_12], %21 {strides = array<i32>} : memref<8x1xf32, #tpu.memory_space<vmem>>, vector<8x1xf32>,
    %c0_13 = arith.constant 0 : index
    %c0_14 = arith.constant 0 : index
    %23 = vector.load %arg6[%c0_13, %c0_14] : memref<8x1xf32, #tpu.memory_space<vmem>>, vector<8x1xf32>
    tpu.vector_store %arg6[%c0_13, %c0_14], %11 {strides = array<i32>} : memref<8x1xf32, #tpu.memory_space<vmem>>, vector<8x1xf32>,
    %c0_i32_15 = arith.constant 0 : i32
    %24 = arith.cmpi eq, %arg1, %c0_i32_15 : i32
    %25 = arith.extui %24 : i1 to i32
    %c0_i32_16 = arith.constant 0 : i32
    %26 = arith.cmpi ne, %25, %c0_i32_16 : i32
    scf.if %26 {
      %c0_17 = arith.constant 0 : index
      %c0_18 = arith.constant 0 : index
      %27 = vector.load %arg6[%c0_17, %c0_18] : memref<8x1xf32, #tpu.memory_space<vmem>>, vector<8x1xf32>
      %c0_19 = arith.constant 0 : index
      %c0_20 = arith.constant 0 : index
      %28 = vector.load %arg7[%c0_19, %c0_20] : memref<8x1xf32, #tpu.memory_space<vmem>>, vector<8x1xf32>
      %29 = math.log %28 : vector<8x1xf32>
      %30 = arith.addf %27, %29 : vector<8x1xf32>
      %c0_21 = arith.constant 0 : index
      %c0_22 = arith.constant 0 : index
      %31 = vector.load %arg8[%c0_21, %c0_22] : memref<8x1xf32, #tpu.memory_space<vmem>>, vector<8x1xf32>
      %32 = arith.subf %30, %31 : vector<8x1xf32>
      %c0_23 = arith.constant 0 : index
      %c0_24 = arith.constant 0 : index
      %33 = vector.load %arg5[%c0_23, %c0_24] : memref<8x1xf32, #tpu.memory_space<vmem>>, vector<8x1xf32>
      tpu.vector_store %arg5[%c0_23, %c0_24], %32 {strides = array<i32>} : memref<8x1xf32, #tpu.memory_space<vmem>>, vector<8x1xf32>,
    } else {
    }
    return
  }
  func.func @transform_0(%arg0: i32, %arg1: i32) -> (i32, i32) {
    %c0_i32 = arith.constant 0 : i32
    %c0_i32_0 = arith.constant 0 : i32
    return %arg0, %c0_i32 : i32, i32
  }
  func.func @transform_1(%arg0: i32, %arg1: i32) -> (i32, i32) {
    %c0_i32 = arith.constant 0 : i32
    %c0_i32_0 = arith.constant 0 : i32
    return %arg0, %c0_i32 : i32, i32
  }
  func.func @transform_2(%arg0: i32, %arg1: i32) -> (i32, i32) {
    %c0_i32 = arith.constant 0 : i32
    %c0_i32_0 = arith.constant 0 : i32
    return %arg1, %c0_i32 : i32, i32
  }
  func.func @transform_3(%arg0: i32, %arg1: i32) -> (i32, i32) {
    %c0_i32 = arith.constant 0 : i32
    %c0_i32_0 = arith.constant 0 : i32
    return %arg0, %c0_i32 : i32, i32
  }
}

</mosaic_0001>

<bundles_post_ra>
// kernel: tpu_custom_call.1
= control target key start
LH: loop header
LB: loop body
LE: loop exit
PB: predicated region body
PF: predicated region fallthrough
CT: control target
= control target key end

     0   :  { %8 = vsyncpa [#allocation6], 0  ;;  %s358_s0 = inlined_call_operand.hbm [shape: f32[8,32], index: 0, kind: input, shape index: {}]   ;;  %s359_s1 = inlined_call_operand.hbm [shape: f32[8,32], index: 1, kind: input, shape index: {}]   ;;  %s360_s2 = inlined_call_operand.hbm [shape: f32[8,32], index: 2, kind: input, shape index: {}]   ;;  %s361_s3 = inlined_call_operand.vmem [shape: f32[8,1], index: 3, kind: output, shape index: {}]  }
   0x1   :  { %9 = vsyncpa [#allocation8], 0  ;;  %s281_s12 = smov [#allocation7]   ;;  %s282_s14 = smov [#allocation5]  }
   0x2   :  { %s26_s13 = sshll.u32 %s281_s12, 4  ;;  %s16_s15 = sshll.u32 %s282_s14, 4  ;;  %s27_s13 = int_to_ptr.vmem [resolvable:$true] %s26_s13  ;;  %s17_s15 = int_to_ptr.vmem [resolvable:$true] %s16_s15 }
   0x3   :  { %s211_s18 = scalar_lea.hbm %s359_s1, 128 }
   0x4   :  { %p212_p0 = scmp.ne.s32.totalorder %s359_s1, %s211_s18  ;;  %p215_p1 = scmp.lt.u32.totalorder %s211_s18, %s359_s1 }
   0x6   :  { %p217_p2 = pnand %p215_p1, %p212_p0 }
   0x8   :  { %220 = shalt.err (!%p217_p2)
}
   0x9   :  { %s221_s23 = scalar_lea.vmem %s27_s13, 128  ;;  %p226_p4 = scmp.lt.s32.totalorder %s27_s13, %s27_s13 }
   0xa   :  { %p222_p3 = scmp.ne.s32.totalorder %s27_s13, %s221_s23  ;;  %p227_p5 = scmp.lt.s32.totalorder %s221_s23, %s221_s23 }
   0xc   :  { %p228_p6 = por %p227_p5, %p226_p4 }
   0xe   :  { %p229_p7 = pnand %p228_p6, %p222_p3 }
  0x10   :  { %232 = shalt.err (!%p229_p7)
}
  0x11   :  { %29 = dma.hbm_to_vmem [thread:$0]  %s359_s1, 128, %s27_s13, [#allocation8]  }
  0x12   :  { %s233_s28 = scalar_lea.hbm %s358_s0, 128 }
  0x13   :  { %p234_p8 = scmp.ne.s32.totalorder %s358_s0, %s233_s28  ;;  %p237_p9 = scmp.lt.u32.totalorder %s233_s28, %s358_s0 }
  0x15   :  { %p239_p10 = pnand %p237_p9, %p234_p8 }
  0x17   :  { %242 = shalt.err (!%p239_p10)
}
  0x18   :  { %s243_s6 = scalar_lea.vmem %s17_s15, 128  ;;  %p248_p12 = scmp.lt.s32.totalorder %s17_s15, %s17_s15 }
  0x19   :  { %p244_p11 = scmp.ne.s32.totalorder %s17_s15, %s243_s6  ;;  %p249_p13 = scmp.lt.s32.totalorder %s243_s6, %s243_s6 }
  0x1b   :  { %p250_p0 = por %p249_p13, %p248_p12 }
  0x1d   :  { %p251_p1 = pnand %p250_p0, %p244_p11 }
  0x1f   :  { %254 = shalt.err (!%p251_p1)
}
  0x20   :  { %19 = dma.hbm_to_vmem [thread:$0]  %s358_s0, 128, %s17_s15, [#allocation6]  }
  0x21   :  { %s283_s8 = smov [#allocation9]   ;;  %s255_s12 = scalar_lea.hbm %s360_s2, 128 }
  0x22   :  { %s36_s9 = sshll.u32 %s283_s8, 4  ;;  %p256_p2 = scmp.ne.s32.totalorder %s360_s2, %s255_s12  ;;  %s37_s9 = int_to_ptr.vmem [resolvable:$true] %s36_s9 }
  0x23   :  { %p259_p3 = scmp.lt.u32.totalorder %s255_s12, %s360_s2 }
  0x25   :  { %p261_p4 = pnand %p259_p3, %p256_p2 }
  0x27   :  { %264 = shalt.err (!%p261_p4)
}
  0x28   :  { %s265_s18 = scalar_lea.vmem %s37_s9, 128  ;;  %p270_p6 = scmp.lt.s32.totalorder %s37_s9, %s37_s9 }
  0x29   :  { %p266_p5 = scmp.ne.s32.totalorder %s37_s9, %s265_s18  ;;  %p271_p7 = scmp.lt.s32.totalorder %s265_s18, %s265_s18 }
  0x2b   :  { %p272_p8 = por %p271_p7, %p270_p6 }
  0x2d   :  { %p273_p9 = pnand %p272_p8, %p266_p5 }
  0x2f   :  { %276 = shalt.err (!%p273_p9)
}
  0x30   :  { %39 = dma.hbm_to_vmem [thread:$0]  %s360_s2, 128, %s37_s9, [#allocation8]  }
  0x31   :  { %277 = dma.done.wait [#allocation6], 128  }
  0x32   :  { %278 = vsyncadd [#allocation6], 4294967168 }
  0x33   :  { %279 = dma.done.wait [#allocation8], 256  }
  0x34   :  { %280 = vsyncadd [#allocation8], 4294967040  ;;  %vm61_vm0 = vcmask 7168   ;;  %v284_v0 = vmov 0.0   ;;  %vm285_vm1 = vmmov 0   ;;  %vm56_vm2 = vcmask 261120  }
  0x35   :  { %64 = vst.msk [vmem:[#allocation3] sm:$0xff] %vm61_vm0, %v284_v0  ;;  %192 = vmatprep.subr.mxu0 %v284_v0  ;;  %194 = vmatprep.mubr.msk.f32.mxu0 %vm285_vm1, %v284_v0  ;;  %v66_v1 = vld [vmem:[#allocation9] sm:$0xff]  ;;  %v65_v2 = vld [vmem:[#allocation5] sm:$0xff]  ;;  %v286_v3 = vmov -inf   ;;  %vm146_vm3 = vcmask 64512   ;;  %v287_v8 = vmov 0  }
  0x36   :  { %193 = vmatpush3.xpose.msk.msra.mxu0 %vm56_vm2, %v66_v1  ;;  %63 = vst.msk [vmem:[#allocation2] sm:$0xff] %vm61_vm0, %v286_v3  ;;  %204 = vset.pattern.permute.xlu0 %v287_v8  ;;  %v54_v16 = vld [vmem:[#allocation7] sm:$0xff] }
  0x37   :  { %v55_v17 = vmul.f32 %v65_v2, %v54_v16 }
  0x39   :  { %195 = vmatmul.mubr.msk.f32.vlgmr.msra.gmra.mrb[0].mxu0 %vm56_vm2, %v65_v2  ;;  %v57_v20 = vsel %vm56_vm2, %v55_v17, 0.0 }
  0x3c   :  { %v151_v23 = vld [vmem:[#allocation3] sm:$0xff] }
  0x3d   :  { %v145_v9 = vld [vmem:[#allocation2] sm:$0xff] }
 0x10c   :  { %v140_v4 = vpop.f32.mrb[0].mxu0 }
 0x10d   :  { %v144_v5 = vmul.f32 14.285714, %v140_v4  ;;  %v196_v6 = vpop.f32.mrb[1].mxu0 }
 0x10f   :  { %v147_v7 = vsel %vm146_vm3, %v144_v5, -inf }
 0x110   :  { %148 = vmax.xlane.f32.xlu0 %v147_v7 }
 0x19d   :  { %v149_v10 = vpop.xlane.xlu0 %148 }
 0x19e   :  { %v150_v11 = vmax.f32 %v145_v9, %v149_v10 }
 0x1a0   :  { %v152_v12 = vsub.f32 %v145_v9, %v150_v11  ;;  %170 = vst.msk [vmem:[#allocation2] sm:$0xff] %vm61_vm0, %v150_v11  ;;  %158 = vperm.xlu0 %204, %v150_v11  }
 0x1a2   :  { %v153_v21 = vmul.f32 1.442695, %v152_v12 }
 0x1a7   :  { %v174_v32 = vld [vmem:[#allocation2] sm:$0xff] }
 0x21f   :  { %v159_v13 = vpop.permute.xlu0 %158 }
 0x220   :  { %v161_v14 = vsub.f32 %v144_v5, %v159_v13 }
 0x222   :  { %v162_v15 = vmul.f32 1.442695, %v161_v14 }
 0x224   :  { %205 = vpow2.f32 %v162_v15 }
 0x225   :  { %207 = vpow2.f32 %v153_v21 }
 0x22e   :  { %v206_v18 = vpop.eup %205 }
 0x22f   :  { %v164_v19 = vsel %vm146_vm3, %v206_v18, 0.0  ;;  %v208_v22 = vpop.eup %207 }
 0x230   :  { %165 = vadd.xlane.f32.xlu1 %v164_v19  ;;  %v155_v24 = vmul.f32 %v208_v22, %v151_v23 }
 0x234   :  { %58 = vadd.xlane.f32.xlu1 %v57_v20 }
 0x2bd   :  { %v166_v25 = vpop.xlane.xlu1 %165 }
 0x2be   :  { %v167_v26 = vadd.f32 %v166_v25, %v155_v24 }
 0x2c0   :  { %169 = vst.msk [vmem:[#allocation3] sm:$0xff] %vm61_vm0, %v167_v26 }
 0x2c1   :  { %v59_v27 = vpop.xlane.xlu1 %58 }
 0x2c2   :  { %v60_v28 = vmul.f32 14.285714, %v59_v27 }
 0x2c4   :  { %62 = vst.msk [vmem:[#allocation4] sm:$0xff] %vm61_vm0, %v60_v28 }
 0x2c7   :  { %v175_v29 = vld [vmem:[#allocation3] sm:$0xff] }
 0x2c8   :  { %209 = vlog2.f32 %v175_v29 }
 0x2cb   :  { %v179_v33 = vld [vmem:[#allocation4] sm:$0xff] }
 0x2d2   :  { %v210_v30 = vpop.eup %209 }
 0x2d3   :  { %v177_v31 = vmul.f32 0.6931472, %v210_v30 }
 0x2d5   :  { %v178_v34 = vadd.f32 %v177_v31, %v174_v32 }
 0x2d7   :  { %v180_v35 = vsub.f32 %v178_v34, %v179_v33 }
 0x2d9   :  { %181 = vst.msk [vmem:[%s361_s3] sm:$0xff] %vm61_vm0, %v180_v35 }
 0x2da   :  { %186 = vsyncpa [#allocation6], 1 }
 0x2db   :  { %187 = vsyncpa [#allocation8], 1 }

</bundles_post_ra>
